<compile_context>
chip_gen: v7x
topology: tpu7x:2x2x1
jax: 0.10.0
libtpu: 0.0.40
codegen_flags: <defaults>
</compile_context>

<pallas_src>
import jax
import jax.numpy as jnp
from jax.experimental import pallas as pl
from jax.experimental.pallas import tpu as pltpu

_MAX_TB = 2048          # cap on the batch tile (lanes per grid step)
_FUSE_MAX_ROWS = 1024   # cap on vocabulary size for the one-hot MXU gather


def _round_up(x, m):
    return (x + m - 1) // m * m


def _vmem_budgets():
    """Generation-aware VMEM limits (v5e/v6e: 128 MiB physical, v7x: 64 MiB)."""
    try:
        phys = int(pltpu.get_tpu_info().vmem_capacity_bytes)
    except Exception:
        phys = 64 * 1024 * 1024           # conservative: v7x per-core VMEM
    limit = min((phys * 3) // 4, 96 * 1024 * 1024)   # scoped limit we request
    budget = limit // 2                              # what we plan tiles against
    return limit, budget


def _choose_tile(b, per_col_bytes, fixed_bytes, budget):
    """Pick batch tile TB (multiple of 128, lane-dense) and padded batch size."""
    avail = max(budget - fixed_bytes, 0)
    cap_blocks = max(1, min(avail // max(per_col_bytes, 1), _MAX_TB) // 128)
    b128 = _round_up(max(b, 1), 128)
    n_blk = b128 // 128
    # Prefer >= 2 grid steps when the batch allows it, so the "parallel" axis
    # can shard across both v7x TensorCores (megacore).
    want_blocks = max(1, n_blk // 2)
    tb = 128 * min(cap_blocks, want_blocks)
    b_pad = _round_up(b128, tb)
    return tb, b_pad


def _g_gather_kernel(ii_ref, jj_ref, ghi_ref, glo_ref, out_ref):
    """out[b] = G[i_b, j_b]; G supplied as an exact bf16 hi/lo split."""
    # ii_ref, jj_ref   : (1, 1, TB) int32 lane-major index rows
    # ghi_ref, glo_ref : (N, N) bf16 VMEM-resident tables (constant index_map)
    # out_ref          : (1, 1, TB) f32 lane-dense output row
    n = ghi_ref.shape[0]
    tb = out_ref.shape[-1]
    i_row = ii_ref[0]                                   # (1, TB)
    j_row = jj_ref[0]                                   # (1, TB)
    row_ids = jax.lax.broadcasted_iota(jnp.int32, (n, tb), 0)
    oh_j = (row_ids == j_row).astype(jnp.bfloat16)      # (N, TB): column b = e_{j_b}
    # Column gather on the MXU: cols[:, b] = G[:, j_b]  (bf16 x one-hot, f32 acc).
    cols = (jnp.dot(ghi_ref[...], oh_j, preferred_element_type=jnp.float32) +
            jnp.dot(glo_ref[...], oh_j, preferred_element_type=jnp.float32))
    # Row select + sublane reduce -> lane-major (TB,) result, unmasked store.
    sel = jnp.where(row_ids == i_row, cols, 0.0)
    out_ref[0, 0, :] = jnp.sum(sel, axis=0)


def _rowdot_kernel(wi_ref, wj_ref, out_ref):
    """Fallback: row dot of pre-gathered embedding rows."""
    prod = wi_ref[...].astype(jnp.float32) * wj_ref[...].astype(jnp.float32)
    out_ref[0, 0, :] = jnp.sum(prod, axis=1)


def _fused_call(i3, j3, g_hi, g_lo, tb, num_tiles, vmem_limit, single_buffer_tables):
    n = g_hi.shape[0]
    b_pad = num_tiles * tb
    if single_buffer_tables:
        # Constant index_map -> block never changes; double-buffering is waste.
        table_spec = pl.BlockSpec((n, n), lambda t: (0, 0),
                                  pipeline_mode=pl.Buffered(1))
    else:
        table_spec = pl.BlockSpec((n, n), lambda t: (0, 0))
    idx_spec = pl.BlockSpec((1, 1, tb), lambda t: (t, 0, 0))
    out_spec = pl.BlockSpec((1, 1, tb), lambda t: (t, 0, 0))
    cost = pl.CostEstimate(
        flops=4 * n * n * b_pad + 2 * n * b_pad,
        transcendentals=0,
        bytes_accessed=2 * (2 * n * n) + 3 * b_pad * 4,
    )
    return pl.pallas_call(
        _g_gather_kernel,
        out_shape=jax.ShapeDtypeStruct((num_tiles, 1, tb), jnp.float32),
        grid_spec=pltpu.PrefetchScalarGridSpec(
            num_scalar_prefetch=0,
            grid=(num_tiles,),
            in_specs=[idx_spec, idx_spec, table_spec, table_spec],
            out_specs=out_spec,
        ),
        compiler_params=pltpu.CompilerParams(
            dimension_semantics=("parallel",),
            vmem_limit_bytes=vmem_limit,
        ),
        cost_estimate=cost,
    )(i3, j3, g_hi, g_lo)


def _rowdot_call(w_i, w_j, tb, num_tiles, vmem_limit):
    d = w_i.shape[1]
    b_pad = num_tiles * tb
    cost = pl.CostEstimate(
        flops=2 * b_pad * d,
        transcendentals=0,
        bytes_accessed=2 * b_pad * d * w_i.dtype.itemsize + b_pad * 4,
    )
    return pl.pallas_call(
        _rowdot_kernel,
        out_shape=jax.ShapeDtypeStruct((num_tiles, 1, tb), jnp.float32),
        grid_spec=pltpu.PrefetchScalarGridSpec(
            num_scalar_prefetch=0,
            grid=(num_tiles,),
            in_specs=[pl.BlockSpec((tb, d), lambda t: (t, 0)),
                      pl.BlockSpec((tb, d), lambda t: (t, 0))],
            out_specs=pl.BlockSpec((1, 1, tb), lambda t: (t, 0, 0)),
        ),
        compiler_params=pltpu.CompilerParams(
            dimension_semantics=("parallel",),
            vmem_limit_bytes=vmem_limit,
        ),
        cost_estimate=cost,
    )(w_i, w_j)


def glove_forward(wi, wj, bi, bj, i_idx, j_idx, *, fuse_gather=None):
    """VisualGloveModel.forward: returns x of shape (B,), float32."""
    wi = jnp.asarray(wi)
    wj = jnp.asarray(wj)
    n, d = wi.shape
    b = int(i_idx.shape[0])
    i_idx = jnp.asarray(i_idx, jnp.int32)
    j_idx = jnp.asarray(j_idx, jnp.int32)
    # Normalize bias shapes: accept (N, 1) (as in the PyTorch module) or (N,).
    bi = jnp.asarray(bi, jnp.float32).reshape(-1)
    bj = jnp.asarray(bj, jnp.float32).reshape(-1)

    vmem_limit, vmem_budget = _vmem_budgets()
    g_resident = 2 * (2 * 2 * n * n)     # hi+lo bf16 tables, double-buffer-safe
    if fuse_gather is None:
        fuse_gather = (n <= _FUSE_MAX_ROWS) and (g_resident <= vmem_budget // 2)

    if fuse_gather:
        # Fold the whole forward into one N x N matrix:
        #   G[i, j] = <wi[i], wj[j]> + bi[i] + bj[j]   ->   out[b] = G[i_b, j_b]
        g = jnp.dot(wi.astype(jnp.float32), wj.astype(jnp.float32).T,
                    preferred_element_type=jnp.float32,
                    precision=jax.lax.Precision.HIGHEST)
        g = g + bi[:, None] + bj[None, :]
        g_hi = g.astype(jnp.bfloat16)
        g_lo = (g - g_hi.astype(jnp.float32)).astype(jnp.bfloat16)

        per_col = 16 * n + 64            # one-hots + gathered columns + masks
        tb, b_pad = _choose_tile(b, per_col, g_resident, vmem_budget)
        num_tiles = b_pad // tb
        pad = b_pad - b
        i3 = jnp.pad(i_idx, (0, pad)).reshape(num_tiles, 1, tb)
        j3 = jnp.pad(j_idx, (0, pad)).reshape(num_tiles, 1, tb)

        try:
            dots = _fused_call(i3, j3, g_hi, g_lo, tb, num_tiles, vmem_limit,
                               single_buffer_tables=True)
        except Exception:
            # pl.Buffered(1) unsupported on this JAX/Mosaic build: fall back to
            # the default (double-buffered) constant-index table spec.
            dots = _fused_call(i3, j3, g_hi, g_lo, tb, num_tiles, vmem_limit,
                               single_buffer_tables=False)
        return dots.reshape(b_pad)[:b]

    # Large-vocabulary fallback: XLA-side gather + lane-dense row-dot kernel.
    # TODO(synk): fuse the gather in-kernel (scalar-prefetch indices + manual
    # double-buffered make_async_copy row DMAs from pl.ANY tables) to avoid the
    # HBM round trip of the gathered (B, D) rows.
    per_col = 2 * d * wi.dtype.itemsize * 2 + 64
    tb, b_pad = _choose_tile(b, per_col, 0, vmem_budget)
    num_tiles = b_pad // tb
    pad = b_pad - b
    i_p = jnp.pad(i_idx, (0, pad))
    j_p = jnp.pad(j_idx, (0, pad))
    w_i = jnp.take(wi, i_p, axis=0)
    w_j = jnp.take(wj, j_p, axis=0)
    dots = _rowdot_call(w_i, w_j, tb, num_tiles, vmem_limit)
    return dots.reshape(b_pad)[:b] + bi[i_idx] + bj[j_idx]


def init_params(key, num_embeddings, embedding_dim):
    """Deterministic parameter init mirroring VisualGloveModel.__init__."""
    k_wi, k_wj = jax.random.split(key)
    wi = jax.random.uniform(k_wi, (num_embeddings, embedding_dim),
                            jnp.float32, minval=-1.0, maxval=1.0)
    wj = jax.random.uniform(k_wj, (num_embeddings, embedding_dim),
                            jnp.float32, minval=-1.0, maxval=1.0)
    bi = jnp.zeros((num_embeddings, 1), jnp.float32)
    bj = jnp.zeros((num_embeddings, 1), jnp.float32)
    return wi, wj, bi, bj


if __name__ == "__main__":
    num_embeddings = 64
    embedding_dim = 128
    batch = 16

    key = jax.random.PRNGKey(0)
    k_param, k_i, k_j = jax.random.split(key, 3)

    wi, wj, bi, bj = init_params(k_param, num_embeddings, embedding_dim)
    i_idx = jax.random.randint(k_i, (batch,), 0, num_embeddings, dtype=jnp.int32)
    j_idx = jax.random.randint(k_j, (batch,), 0, num_embeddings, dtype=jnp.int32)

    # Pure-JAX reference (exact f32 elementwise dot).
    ref = jnp.sum(wi[i_idx] * wj[j_idx], axis=1) + bi[i_idx, 0] + bj[j_idx, 0]
    ref = jax.block_until_ready(ref)

    # Fused path: G = wi @ wj.T (+ biases) resident in VMEM, gathered on MXU.
    x_fused = jax.block_until_ready(
        glove_forward(wi, wj, bi, bj, i_idx, j_idx, fuse_gather=True))
    assert x_fused.shape == (batch,)
    assert jnp.allclose(x_fused, ref, atol=1e-4, rtol=1e-4), "fused path mismatch"

    # Large-table fallback path (XLA gather + row-dot kernel).
    x_split = jax.block_until_ready(
        glove_forward(wi, wj, bi, bj, i_idx, j_idx, fuse_gather=False))
    assert x_split.shape == (batch,)
    assert jnp.allclose(x_split, ref, atol=1e-5, rtol=1e-5), "fallback path mismatch"

    print("KERNEL_OK")
</pallas_src>

<mosaic_0001>
module attributes {stable_mosaic.version = 11 : i64} {
  func.func @_g_gather_kernel(%arg0: i32, %arg1: memref<1x1x128xi32, #tpu.memory_space<vmem>>, %arg2: memref<1x1x128xi32, #tpu.memory_space<vmem>>, %arg3: memref<64x64xbf16, #tpu.memory_space<vmem>>, %arg4: memref<64x64xbf16, #tpu.memory_space<vmem>>, %arg5: memref<1x1x128xf32, #tpu.memory_space<vmem>>) attributes {dimension_semantics = [#tpu.dimension_semantics<parallel>], iteration_bounds = array<i64: 1>, scalar_prefetch = 0 : i64, scratch_operands = 0 : i64, tpu.core_type = #tpu.core_type<tc>, window_params = [{transform_indices = @transform_0, window_bounds = array<i64: 1, 1, 128>}, {transform_indices = @transform_1, window_bounds = array<i64: 1, 1, 128>}, {pipeline_mode = #tpu.pipeline_mode<synchronous>, transform_indices = @transform_2, window_bounds = array<i64: 64, 64>}, {pipeline_mode = #tpu.pipeline_mode<synchronous>, transform_indices = @transform_3, window_bounds = array<i64: 64, 64>}, {transform_indices = @transform_4, window_bounds = array<i64: 1, 1, 128>}]} {
    %c0 = arith.constant 0 : index
    %c0_0 = arith.constant 0 : index
    %c0_1 = arith.constant 0 : index
    %0 = vector.load %arg1[%c0, %c0_0, %c0_1] : memref<1x1x128xi32, #tpu.memory_space<vmem>>, vector<1x1x128xi32>
    %1 = vector.shape_cast %0 : vector<1x1x128xi32> to vector<1x128xi32>
    %c0_2 = arith.constant 0 : index
    %c0_3 = arith.constant 0 : index
    %c0_4 = arith.constant 0 : index
    %2 = vector.load %arg2[%c0_2, %c0_3, %c0_4] : memref<1x1x128xi32, #tpu.memory_space<vmem>>, vector<1x1x128xi32>
    %3 = vector.shape_cast %2 : vector<1x1x128xi32> to vector<1x128xi32>
    %4 = tpu.iota {dimensions = array<i32: 0>} : vector<64x128xi32>
    %5 = vector.broadcast %3 : vector<1x128xi32> to vector<64x128xi32>
    %6 = arith.cmpi eq, %4, %5 : vector<64x128xi32>
    %7 = arith.extui %6 : vector<64x128xi1> to vector<64x128xi32>
    %8 = arith.sitofp %7 : vector<64x128xi32> to vector<64x128xf32>
    %9 = arith.truncf %8 : vector<64x128xf32> to vector<64x128xbf16>
    %c0_5 = arith.constant 0 : index
    %c0_6 = arith.constant 0 : index
    %10 = vector.load %arg3[%c0_5, %c0_6] : memref<64x64xbf16, #tpu.memory_space<vmem>>, vector<64x64xbf16>
    %cst = arith.constant dense<0.000000e+00> : vector<64x128xf32>
    %11 = tpu.matmul %10, %9, %cst {dimension_numbers = #tpu.dot_dimension_numbers<[1], [0], [0], [1], [0, 0, 1, 1], [], []>} : vector<64x64xbf16>, vector<64x128xbf16>, vector<64x128xf32> -> vector<64x128xf32>
    %c0_7 = arith.constant 0 : index
    %c0_8 = arith.constant 0 : index
    %12 = vector.load %arg4[%c0_7, %c0_8] : memref<64x64xbf16, #tpu.memory_space<vmem>>, vector<64x64xbf16>
    %cst_9 = arith.constant dense<0.000000e+00> : vector<64x128xf32>
    %13 = tpu.matmul %12, %9, %cst_9 {dimension_numbers = #tpu.dot_dimension_numbers<[1], [0], [0], [1], [0, 0, 1, 1], [], []>} : vector<64x64xbf16>, vector<64x128xbf16>, vector<64x128xf32> -> vector<64x128xf32>
    %14 = arith.addf %11, %13 : vector<64x128xf32>
    %15 = vector.broadcast %1 : vector<1x128xi32> to vector<64x128xi32>
    %16 = arith.cmpi eq, %4, %15 : vector<64x128xi32>
    %cst_10 = arith.constant 0.000000e+00 : f32
    %17 = vector.broadcast %cst_10 : f32 to vector<64x128xf32>
    %18 = arith.select %16, %14, %17 : vector<64x128xi1>, vector<64x128xf32>
    %cst_11 = arith.constant dense<0.000000e+00> : vector<128xf32>
    %19 = vector.multi_reduction <add>, %18, %cst_11 [0] : vector<64x128xf32> to vector<128xf32>
    %c0_12 = arith.constant 0 : index
    %c0_13 = arith.constant 0 : index
    %c0_14 = arith.constant 0 : index
    %20 = vector.load %arg5[%c0_12, %c0_13, %c0_14] : memref<1x1x128xf32, #tpu.memory_space<vmem>>, vector<1x1x128xf32>
    %21 = vector.shape_cast %20 : vector<1x1x128xf32> to vector<128xf32>
    %22 = vector.shape_cast %19 : vector<128xf32> to vector<1x1x128xf32>
    tpu.vector_store %arg5[%c0_12, %c0_13, %c0_14], %22 {strides = array<i32>} : memref<1x1x128xf32, #tpu.memory_space<vmem>>, vector<1x1x128xf32>,
    return
  }
  func.func @transform_0(%arg0: i32) -> (i32, i32, i32) {
    %c0_i32 = arith.constant 0 : i32
    %c0_i32_0 = arith.constant 0 : i32
    %c0_i32_1 = arith.constant 0 : i32
    return %arg0, %c0_i32, %c0_i32_0 : i32, i32, i32
  }
  func.func @transform_1(%arg0: i32) -> (i32, i32, i32) {
    %c0_i32 = arith.constant 0 : i32
    %c0_i32_0 = arith.constant 0 : i32
    %c0_i32_1 = arith.constant 0 : i32
    return %arg0, %c0_i32, %c0_i32_0 : i32, i32, i32
  }
  func.func @transform_2(%arg0: i32) -> (i32, i32) {
    %c0_i32 = arith.constant 0 : i32
    %c0_i32_0 = arith.constant 0 : i32
    %c0_i32_1 = arith.constant 0 : i32
    return %c0_i32, %c0_i32_0 : i32, i32
  }
  func.func @transform_3(%arg0: i32) -> (i32, i32) {
    %c0_i32 = arith.constant 0 : i32
    %c0_i32_0 = arith.constant 0 : i32
    %c0_i32_1 = arith.constant 0 : i32
    return %c0_i32, %c0_i32_0 : i32, i32
  }
  func.func @transform_4(%arg0: i32) -> (i32, i32, i32) {
    %c0_i32 = arith.constant 0 : i32
    %c0_i32_0 = arith.constant 0 : i32
    %c0_i32_1 = arith.constant 0 : i32
    return %arg0, %c0_i32, %c0_i32_0 : i32, i32, i32
  }
}

module attributes {stable_mosaic.version = 11 : i64} {
  func.func @_g_gather_kernel(%arg0: i32, %arg1: memref<1x1x128xi32, #tpu.memory_space<vmem>>, %arg2: memref<1x1x128xi32, #tpu.memory_space<vmem>>, %arg3: memref<64x64xbf16, #tpu.memory_space<vmem>>, %arg4: memref<64x64xbf16, #tpu.memory_space<vmem>>, %arg5: memref<1x1x128xf32, #tpu.memory_space<vmem>>) attributes {dimension_semantics = [#tpu.dimension_semantics<parallel>], iteration_bounds = array<i64: 1>, scalar_prefetch = 0 : i64, scratch_operands = 0 : i64, tpu.core_type = #tpu.core_type<tc>, window_params = [{transform_indices = @transform_0, window_bounds = array<i64: 1, 1, 128>}, {transform_indices = @transform_1, window_bounds = array<i64: 1, 1, 128>}, {pipeline_mode = #tpu.pipeline_mode<synchronous>, transform_indices = @transform_2, window_bounds = array<i64: 64, 64>}, {pipeline_mode = #tpu.pipeline_mode<synchronous>, transform_indices = @transform_3, window_bounds = array<i64: 64, 64>}, {transform_indices = @transform_4, window_bounds = array<i64: 1, 1, 128>}]} {
    %c0 = arith.constant 0 : index
    %c0_0 = arith.constant 0 : index
    %c0_1 = arith.constant 0 : index
    %0 = vector.load %arg1[%c0, %c0_0, %c0_1] : memref<1x1x128xi32, #tpu.memory_space<vmem>>, vector<1x1x128xi32>
    %1 = vector.shape_cast %0 : vector<1x1x128xi32> to vector<1x128xi32>
    %c0_2 = arith.constant 0 : index
    %c0_3 = arith.constant 0 : index
    %c0_4 = arith.constant 0 : index
    %2 = vector.load %arg2[%c0_2, %c0_3, %c0_4] : memref<1x1x128xi32, #tpu.memory_space<vmem>>, vector<1x1x128xi32>
    %3 = vector.shape_cast %2 : vector<1x1x128xi32> to vector<1x128xi32>
    %4 = tpu.iota {dimensions = array<i32: 0>} : vector<64x128xi32>
    %5 = vector.broadcast %3 : vector<1x128xi32> to vector<64x128xi32>
    %6 = arith.cmpi eq, %4, %5 : vector<64x128xi32>
    %7 = arith.extui %6 : vector<64x128xi1> to vector<64x128xi32>
    %8 = arith.sitofp %7 : vector<64x128xi32> to vector<64x128xf32>
    %9 = arith.truncf %8 : vector<64x128xf32> to vector<64x128xbf16>
    %c0_5 = arith.constant 0 : index
    %c0_6 = arith.constant 0 : index
    %10 = vector.load %arg3[%c0_5, %c0_6] : memref<64x64xbf16, #tpu.memory_space<vmem>>, vector<64x64xbf16>
    %cst = arith.constant dense<0.000000e+00> : vector<64x128xf32>
    %11 = tpu.matmul %10, %9, %cst {dimension_numbers = #tpu.dot_dimension_numbers<[1], [0], [0], [1], [0, 0, 1, 1], [], []>} : vector<64x64xbf16>, vector<64x128xbf16>, vector<64x128xf32> -> vector<64x128xf32>
    %c0_7 = arith.constant 0 : index
    %c0_8 = arith.constant 0 : index
    %12 = vector.load %arg4[%c0_7, %c0_8] : memref<64x64xbf16, #tpu.memory_space<vmem>>, vector<64x64xbf16>
    %cst_9 = arith.constant dense<0.000000e+00> : vector<64x128xf32>
    %13 = tpu.matmul %12, %9, %cst_9 {dimension_numbers = #tpu.dot_dimension_numbers<[1], [0], [0], [1], [0, 0, 1, 1], [], []>} : vector<64x64xbf16>, vector<64x128xbf16>, vector<64x128xf32> -> vector<64x128xf32>
    %14 = arith.addf %11, %13 : vector<64x128xf32>
    %15 = vector.broadcast %1 : vector<1x128xi32> to vector<64x128xi32>
    %16 = arith.cmpi eq, %4, %15 : vector<64x128xi32>
    %cst_10 = arith.constant 0.000000e+00 : f32
    %17 = vector.broadcast %cst_10 : f32 to vector<64x128xf32>
    %18 = arith.select %16, %14, %17 : vector<64x128xi1>, vector<64x128xf32>
    %cst_11 = arith.constant dense<0.000000e+00> : vector<128xf32>
    %19 = vector.multi_reduction <add>, %18, %cst_11 [0] : vector<64x128xf32> to vector<128xf32>
    %c0_12 = arith.constant 0 : index
    %c0_13 = arith.constant 0 : index
    %c0_14 = arith.constant 0 : index
    %20 = vector.load %arg5[%c0_12, %c0_13, %c0_14] : memref<1x1x128xf32, #tpu.memory_space<vmem>>, vector<1x1x128xf32>
    %21 = vector.shape_cast %20 : vector<1x1x128xf32> to vector<128xf32>
    %22 = vector.shape_cast %19 : vector<128xf32> to vector<1x1x128xf32>
    tpu.vector_store %arg5[%c0_12, %c0_13, %c0_14], %22 {strides = array<i32>} : memref<1x1x128xf32, #tpu.memory_space<vmem>>, vector<1x1x128xf32>,
    return
  }
  func.func @transform_0(%arg0: i32) -> (i32, i32, i32) {
    %c0_i32 = arith.constant 0 : i32
    %c0_i32_0 = arith.constant 0 : i32
    %c0_i32_1 = arith.constant 0 : i32
    return %arg0, %c0_i32, %c0_i32_0 : i32, i32, i32
  }
  func.func @transform_1(%arg0: i32) -> (i32, i32, i32) {
    %c0_i32 = arith.constant 0 : i32
    %c0_i32_0 = arith.constant 0 : i32
    %c0_i32_1 = arith.constant 0 : i32
    return %arg0, %c0_i32, %c0_i32_0 : i32, i32, i32
  }
  func.func @transform_2(%arg0: i32) -> (i32, i32) {
    %c0_i32 = arith.constant 0 : i32
    %c0_i32_0 = arith.constant 0 : i32
    %c0_i32_1 = arith.constant 0 : i32
    return %c0_i32, %c0_i32_0 : i32, i32
  }
  func.func @transform_3(%arg0: i32) -> (i32, i32) {
    %c0_i32 = arith.constant 0 : i32
    %c0_i32_0 = arith.constant 0 : i32
    %c0_i32_1 = arith.constant 0 : i32
    return %c0_i32, %c0_i32_0 : i32, i32
  }
  func.func @transform_4(%arg0: i32) -> (i32, i32, i32) {
    %c0_i32 = arith.constant 0 : i32
    %c0_i32_0 = arith.constant 0 : i32
    %c0_i32_1 = arith.constant 0 : i32
    return %arg0, %c0_i32, %c0_i32_0 : i32, i32, i32
  }
}

</mosaic_0001>

<bundles_post_ra>
// kernel: tpu_custom_call.1
= control target key start
LH: loop header
LB: loop body
LE: loop exit
PB: predicated region body
PF: predicated region fallthrough
CT: control target
= control target key end

     0   :  { %9 = vsyncpa [#allocation3], 0  ;;  %s705_s0 = inlined_call_operand.hbm [shape: s32[1,1,128], index: 0, kind: input, shape index: {}]   ;;  %s706_s1 = inlined_call_operand.vmem [shape: s32[1,1,128], index: 1, kind: input, shape index: {}]   ;;  %s707_s2 = inlined_call_operand.hbm [shape: bf16[64,64], index: 2, kind: input, shape index: {}]   ;;  %s708_s3 = inlined_call_operand.hbm [shape: bf16[64,64], index: 3, kind: input, shape index: {}]   ;;  %s709_s4 = inlined_call_operand.hbm [shape: f32[1,1,128], index: 4, kind: output, shape index: {}]  }
   0x1   :  { %10 = vsyncpa [#allocation6], 0 }
   0x2   :  { %11 = vsyncpa [#allocation4], 0  ;;  %s569_s15 = smov [#allocation5]   ;;  %s475_s19 = scalar_lea.hbm %s707_s2, 512 }
   0x3   :  { %s29_s16 = sshll.u32 %s569_s15, 4  ;;  %p476_p0 = scmp.ne.s32.totalorder %s707_s2, %s475_s19  ;;  %s30_s16 = int_to_ptr.vmem [resolvable:$true] %s29_s16 }
   0x4   :  { %p479_p1 = scmp.lt.u32.totalorder %s475_s19, %s707_s2 }
   0x6   :  { %p481_p2 = pnand %p479_p1, %p476_p0 }
   0x8   :  { %484 = shalt.err (!%p481_p2)
}
   0x9   :  { %s485_s24 = scalar_lea.vmem %s30_s16, 512  ;;  %p490_p4 = scmp.lt.s32.totalorder %s30_s16, %s30_s16 }
   0xa   :  { %p486_p3 = scmp.ne.s32.totalorder %s30_s16, %s485_s24  ;;  %p491_p5 = scmp.lt.s32.totalorder %s485_s24, %s485_s24 }
   0xc   :  { %p492_p6 = por %p491_p5, %p490_p4 }
   0xe   :  { %p493_p7 = pnand %p492_p6, %p486_p3 }
  0x10   :  { %496 = shalt.err (!%p493_p7)
}
  0x11   :  { %s570_s25 = smov 64   ;;  %s571_s26 = smov 4  }
  0x12   :  { %35 = dma.hbm_to_vmem [thread:$0]  %s707_s2, 512, %s30_s16, [#allocation6], %s570_s25, %s570_s25, %s571_s26  }
  0x13   :  { %s572_s29 = smov [#allocation2]   ;;  %s573_s5 = smov [#allocation7]  }
  0x14   :  { %s18_s30 = sshll.u32 %s572_s29, 4  ;;  %s41_s6 = sshll.u32 %s573_s5, 4  ;;  %s19_s30 = int_to_ptr.vmem [resolvable:$true] %s18_s30  ;;  %s42_s6 = int_to_ptr.vmem [resolvable:$true] %s41_s6 }
  0x15   :  { %s497_s9 = scalar_lea.hbm %s705_s0, 16 }
  0x16   :  { %p498_p8 = scmp.ne.s32.totalorder %s705_s0, %s497_s9  ;;  %p501_p9 = scmp.lt.u32.totalorder %s497_s9, %s705_s0 }
  0x18   :  { %p503_p10 = pnand %p501_p9, %p498_p8 }
  0x1a   :  { %506 = shalt.err (!%p503_p10)
}
  0x1b   :  { %s507_s2 = scalar_lea.vmem %s19_s30, 16  ;;  %s511_s14 = scalar_lea.vmem %s19_s30, 32 }
  0x1c   :  { %p508_p11 = scmp.ne.s32.totalorder %s19_s30, %s507_s2  ;;  %p512_p12 = scmp.lt.s32.totalorder %s19_s30, %s19_s30 }
  0x1d   :  { %p513_p13 = scmp.lt.s32.totalorder %s511_s14, %s507_s2 }
  0x1f   :  { %p514_p0 = por %p513_p13, %p512_p12 }
  0x21   :  { %p515_p1 = pnand %p514_p0, %p508_p11 }
  0x23   :  { %518 = shalt.err (!%p515_p1)
}
  0x24   :  { %21 = dma.hbm_to_vmem [thread:$0]  %s705_s0, 16, %s19_s30, [#allocation3]  }
  0x25   :  { %s519_s19 = scalar_lea.hbm %s708_s3, 512 }
  0x26   :  { %p520_p2 = scmp.ne.s32.totalorder %s708_s3, %s519_s19  ;;  %p523_p3 = scmp.lt.u32.totalorder %s519_s19, %s708_s3 }
  0x28   :  { %p525_p4 = pnand %p523_p3, %p520_p2 }
  0x2a   :  { %528 = shalt.err (!%p525_p4)
}
  0x2b   :  { %s529_s24 = scalar_lea.vmem %s42_s6, 512  ;;  %p534_p6 = scmp.lt.s32.totalorder %s42_s6, %s42_s6 }
  0x2c   :  { %p530_p5 = scmp.ne.s32.totalorder %s42_s6, %s529_s24  ;;  %p535_p7 = scmp.lt.s32.totalorder %s529_s24, %s529_s24 }
  0x2e   :  { %p536_p8 = por %p535_p7, %p534_p6 }
  0x30   :  { %p537_p9 = pnand %p536_p8, %p530_p5 }
  0x32   :  { %540 = shalt.err (!%p537_p9)
}
  0x33   :  { %47 = dma.hbm_to_vmem [thread:$0]  %s708_s3, 512, %s42_s6, [#allocation6], %s570_s25, %s570_s25, %s571_s26  }
  0x34   :  { %563 = dma.done.wait [#allocation3], 16  }
  0x35   :  { %564 = vsyncadd [#allocation3], 4294967280 }
  0x36   :  { %565 = dma.done.wait [#allocation6], 1024  }
  0x37   :  { %566 = vsyncadd [#allocation6], 4294966272  ;;  %v60_v0 = vlaneseq  ;;  %v362_v7 = vld [vmem:[%s706_s1] ss:$0 sm:$0xff]  ;;  %v467_v8 = vld [vmem:[#allocation7] sm:$0xff]   ;;  %vm137_vm5 = vcmask 523264  }
  0x38   :  { %v468_v9 = vld [vmem:[#allocation5] sm:$0xff]   ;;  %v574_v10 = vmov 1.0|1.0   ;;  %428 = vmatprep.mubr.msk.bf16.mxu1 %vm137_vm5, %v467_v8  ;;  %v469_v13 = vld [vmem:[#allocation7 + $0x8] sm:$0xff]   ;;  %v471_v15 = vld [vmem:[#allocation7 + $0x10] sm:$0xff]   ;;  %s575_s1 = smov [#allocation8]  }
  0x39   :  { %v643_v1 = vshrl.u32 %v60_v0, 7  ;;  %444 = vmatprep.mubr.msk.bf16.mxu0 %vm137_vm5, %v468_v9  ;;  %v470_v14 = vld [vmem:[#allocation5 + $0x8] sm:$0xff]   ;;  %v472_v16 = vld [vmem:[#allocation5 + $0x10] sm:$0xff]   ;;  %v473_v17 = vld [vmem:[#allocation7 + $0x18] sm:$0xff]   ;;  %s352_s26 = sshll.u32 %s575_s1, 4  ;;  %s353_s26 = int_to_ptr.vmem [resolvable:$true] %s352_s26 }
  0x3a   :  { %v474_v18 = vld [vmem:[#allocation5 + $0x18] sm:$0xff]   ;;  %s541_s28 = scalar_lea.vmem %s353_s26, 16  ;;  %s545_s29 = scalar_lea.vmem %s353_s26, 32 }
  0x3b   :  { %v646_v2 = vadd.s32 8, %v643_v1  ;;  %v649_v3 = vadd.s32 16, %v643_v1  ;;  %v652_v4 = vadd.s32 24, %v643_v1  ;;  %v655_v5 = vadd.s32 32, %v643_v1  ;;  %v403_v20 = vld [vmem:[#allocation2] ss:$0 sm:$0xff]  ;;  %p542_p10 = scmp.ne.s32.totalorder %s353_s26, %s541_s28  ;;  %p546_p11 = scmp.lt.s32.totalorder %s353_s26, %s353_s26 }
  0x3c   :  { %v658_v6 = vadd.s32 40, %v643_v1  ;;  %vm73_vm0 = vcmp.eq.s32.totalorder %v643_v1, %v362_v7  ;;  %v670_v11 = vadd.s32 48, %v643_v1  ;;  %v673_v12 = vadd.s32 56, %v643_v1  ;;  %p547_p12 = scmp.lt.s32.totalorder %s545_s29, %s541_s28 }
  0x3d   :  { %vm74_vm1 = vcmp.eq.s32.totalorder %v646_v2, %v362_v7  ;;  %vm75_vm2 = vcmp.eq.s32.totalorder %v649_v3, %v362_v7  ;;  %vm76_vm3 = vcmp.eq.s32.totalorder %v652_v4, %v362_v7  ;;  %vm77_vm7 = vcmp.eq.s32.totalorder %v655_v5, %v362_v7 }
  0x3e   :  { %vm375_vm4 = vmpackc.low %vm74_vm1, %vm73_vm0  ;;  %vm78_vm8 = vcmp.eq.s32.totalorder %v658_v6, %v362_v7  ;;  %vm79_vm10 = vcmp.eq.s32.totalorder %v670_v11, %v362_v7  ;;  %vm80_vm11 = vcmp.eq.s32.totalorder %v673_v12, %v362_v7  ;;  %vm316_vm13 = vcmp.eq.s32.totalorder %v643_v1, %v403_v20  ;;  %p548_p13 = por %p547_p12, %p546_p11 }
  0x3f   :  { %420 = vmatprep.subr.msk.bf16.mxu1 %vm375_vm4, %v574_v10  ;;  %436 = vmatprep.subr.msk.bf16.mxu0 %vm375_vm4, %v574_v10  ;;  %vm377_vm6 = vmpackc.low %vm76_vm3, %vm75_vm2  ;;  %vm317_vm14 = vcmp.eq.s32.totalorder %v646_v2, %v403_v20  ;;  %vm318_vm15 = vcmp.eq.s32.totalorder %v649_v3, %v403_v20  ;;  %vm319_vm0 = vcmp.eq.s32.totalorder %v652_v4, %v403_v20 }
  0x40   :  { %421 = vmatpush3.bf16.msk.msra.mxu1 %vm375_vm4, %v574_v10  ;;  %437 = vmatpush3.bf16.msk.msra.mxu0 %vm375_vm4, %v574_v10  ;;  %vm379_vm9 = vmpackc.low %vm78_vm8, %vm77_vm7  ;;  %vm320_vm1 = vcmp.eq.s32.totalorder %v655_v5, %v403_v20  ;;  %vm321_vm2 = vcmp.eq.s32.totalorder %v658_v6, %v403_v20  ;;  %vm322_vm3 = vcmp.eq.s32.totalorder %v670_v11, %v403_v20  ;;  %p549_p0 = pnand %p548_p13, %p542_p10 }
  0x41   :  { %422 = vmatprep.subr.msk.bf16.mxu1 %vm377_vm6, %v574_v10  ;;  %438 = vmatprep.subr.msk.bf16.mxu0 %vm377_vm6, %v574_v10  ;;  %vm381_vm12 = vmpackc.low %vm80_vm11, %vm79_vm10  ;;  %vm323_vm4 = vcmp.eq.s32.totalorder %v673_v12, %v403_v20 }
  0x44   :  { %423 = vmatpush3.bf16.msk.msra.mxu1 %vm377_vm6, %v574_v10  ;;  %439 = vmatpush3.bf16.msk.msra.mxu0 %vm377_vm6, %v574_v10 }
  0x45   :  { %424 = vmatprep.subr.msk.bf16.mxu1 %vm379_vm9, %v574_v10  ;;  %440 = vmatprep.subr.msk.bf16.mxu0 %vm379_vm9, %v574_v10 }
  0x48   :  { %425 = vmatpush3.bf16.msk.msra.mxu1 %vm379_vm9, %v574_v10  ;;  %441 = vmatpush3.bf16.msk.msra.mxu0 %vm379_vm9, %v574_v10 }
  0x49   :  { %426 = vmatprep.subr.msk.bf16.mxu1 %vm381_vm12, %v574_v10  ;;  %442 = vmatprep.subr.msk.bf16.mxu0 %vm381_vm12, %v574_v10 }
  0x4c   :  { %427 = vmatpush3.bf16.msk.msra.mxu1 %vm381_vm12, %v574_v10  ;;  %443 = vmatpush3.bf16.msk.msra.mxu0 %vm381_vm12, %v574_v10 }
  0x4f   :  { %429 = vmatmul.mubr.msk.bf16.vlgmr.msra.gmra.mrb[0].mxu1 %vm137_vm5, %v469_v13  ;;  %445 = vmatmul.mubr.msk.bf16.vlgmr.msra.gmra.mrb[0].mxu0 %vm137_vm5, %v470_v14 }
  0x50   :  { %432 = vmatprep.mubr.msk.bf16.mxu1 %vm137_vm5, %v471_v15  ;;  %448 = vmatprep.mubr.msk.bf16.mxu0 %vm137_vm5, %v472_v16 }
  0x57   :  { %433 = vmatmul.mubr.msk.bf16.gmra.mrb[4].mxu1 %vm137_vm5, %v473_v17  ;;  %449 = vmatmul.mubr.msk.bf16.gmra.mrb[4].mxu0 %vm137_vm5, %v474_v18 }
 0x122   :  { %v430_v19 = vpop.f32.mrb[0].mxu1  ;;  %v446_v21 = vpop.f32.mrb[0].mxu0 }
 0x123   :  { %v290_v22 = vadd.f32 %v446_v21, %v430_v19  ;;  %v184_v23 = vpop.f32.mrb[1].mxu1  ;;  %v281_v24 = vpop.f32.mrb[1].mxu0 }
 0x124   :  { %v282_v25 = vadd.f32 %v281_v24, %v184_v23  ;;  %v431_v26 = vpop.f32.mrb[2].mxu1  ;;  %v447_v27 = vpop.f32.mrb[2].mxu0 }
 0x125   :  { %v293_v28 = vadd.f32 %v447_v27, %v431_v26  ;;  %v187_v29 = vpop.f32.mrb[3].mxu1  ;;  %v284_v30 = vpop.f32.mrb[3].mxu0  ;;  %v326_v35 = vsel %vm318_vm15, %v290_v22, 0.0 }
 0x126   :  { %v285_v31 = vadd.f32 %v284_v30, %v187_v29  ;;  %v324_v32 = vsel %vm316_vm13, %v282_v25, 0.0 }
 0x127   :  { %v327_v42 = vsel %vm319_vm0, %v293_v28, 0.0 }
 0x128   :  { %v325_v33 = vsel %vm317_vm14, %v285_v31, 0.0 }
 0x129   :  { %v332_v34 = vadd.f32 %v325_v33, %v324_v32 }
 0x12a   :  { %v434_v36 = vpop.f32.mrb[4].mxu1  ;;  %v450_v37 = vpop.f32.mrb[4].mxu0 }
 0x12b   :  { %v333_v38 = vadd.f32 %v332_v34, %v326_v35  ;;  %v306_v39 = vadd.f32 %v450_v37, %v434_v36  ;;  %v200_v40 = vpop.f32.mrb[5].mxu1  ;;  %v297_v41 = vpop.f32.mrb[5].mxu0 }
 0x12c   :  { %v298_v43 = vadd.f32 %v297_v41, %v200_v40  ;;  %v435_v44 = vpop.f32.mrb[6].mxu1  ;;  %v451_v45 = vpop.f32.mrb[6].mxu0 }
 0x12d   :  { %v334_v46 = vadd.f32 %v333_v38, %v327_v42  ;;  %v309_v47 = vadd.f32 %v451_v45, %v435_v44  ;;  %v203_v48 = vpop.f32.mrb[7].mxu1  ;;  %v300_v49 = vpop.f32.mrb[7].mxu0  ;;  %v330_v55 = vsel %vm322_vm3, %v306_v39, 0.0 }
 0x12e   :  { %v328_v50 = vsel %vm320_vm1, %v298_v43, 0.0  ;;  %v301_v51 = vadd.f32 %v300_v49, %v203_v48 }
 0x12f   :  { %v335_v52 = vadd.f32 %v334_v46, %v328_v50  ;;  %v331_v57 = vsel %vm323_vm4, %v309_v47, 0.0 }
 0x130   :  { %v329_v53 = vsel %vm321_vm2, %v301_v51, 0.0 }
 0x131   :  { %v336_v54 = vadd.f32 %v335_v52, %v329_v53 }
 0x133   :  { %v337_v56 = vadd.f32 %v336_v54, %v330_v55 }
 0x135   :  { %v338_v58 = vadd.f32 %v337_v56, %v331_v57 }
 0x137   :  { %v339_v59 = vrot.slane %v338_v58, 4 }
 0x139   :  { %v340_v60 = vadd.f32 %v339_v59, %v338_v58 }
 0x13b   :  { %v341_v61 = vrot.slane %v340_v60, 2 }
 0x13d   :  { %v342_v62 = vadd.f32 %v341_v61, %v340_v60 }
 0x13f   :  { %v343_v63 = vrot.slane %v342_v62, 1 }
 0x141   :  { %v344_v0 = vadd.f32 %v343_v63, %v342_v62 }
 0x143   :  { %345 = vst [vmem:[#allocation8] sm:$0x1] %v344_v0 }
 0x144   :  { %552 = shalt.err (!%p549_p0)
}
 0x145   :  { %s553_s6 = scalar_lea.hbm %s709_s4, 16 }
 0x146   :  { %p554_p1 = scmp.ne.s32.totalorder %s709_s4, %s553_s6  ;;  %p557_p2 = scmp.lt.u32.totalorder %s553_s6, %s709_s4 }
 0x148   :  { %p559_p3 = pnand %p557_p2, %p554_p1 }
 0x14a   :  { %562 = shalt.err (!%p559_p3)
}
 0x14b   :  { %355 = dma.vmem_to_hbm [thread:$0]  %s353_s26, 16, %s709_s4, [#allocation4]  }
 0x14c   :  { %567 = dma.done.wait [#allocation4], 16  }
 0x14d   :  { %568 = vsyncadd [#allocation4], 4294967280 }
 0x14e   :  { %359 = vsyncpa [#allocation3], 1 }
 0x14f   :  { %360 = vsyncpa [#allocation6], 1 }
 0x150   :  { %361 = vsyncpa [#allocation4], 1 }

// kernel: tpu_custom_call.1
= control target key start
LH: loop header
LB: loop body
LE: loop exit
PB: predicated region body
PF: predicated region fallthrough
CT: control target
= control target key end

     0   :  { %9 = vsyncpa [#allocation3], 0  ;;  %s705_s0 = inlined_call_operand.hbm [shape: s32[1,1,128], index: 0, kind: input, shape index: {}]   ;;  %s706_s1 = inlined_call_operand.vmem [shape: s32[1,1,128], index: 1, kind: input, shape index: {}]   ;;  %s707_s2 = inlined_call_operand.hbm [shape: bf16[64,64], index: 2, kind: input, shape index: {}]   ;;  %s708_s3 = inlined_call_operand.hbm [shape: bf16[64,64], index: 3, kind: input, shape index: {}]   ;;  %s709_s4 = inlined_call_operand.hbm [shape: f32[1,1,128], index: 4, kind: output, shape index: {}]  }
   0x1   :  { %10 = vsyncpa [#allocation6], 0 }
   0x2   :  { %11 = vsyncpa [#allocation4], 0  ;;  %s569_s15 = smov [#allocation5]   ;;  %s475_s19 = scalar_lea.hbm %s707_s2, 512 }
   0x3   :  { %s29_s16 = sshll.u32 %s569_s15, 4  ;;  %p476_p0 = scmp.ne.s32.totalorder %s707_s2, %s475_s19  ;;  %s30_s16 = int_to_ptr.vmem [resolvable:$true] %s29_s16 }
   0x4   :  { %p479_p1 = scmp.lt.u32.totalorder %s475_s19, %s707_s2 }
   0x6   :  { %p481_p2 = pnand %p479_p1, %p476_p0 }
   0x8   :  { %484 = shalt.err (!%p481_p2)
}
   0x9   :  { %s485_s24 = scalar_lea.vmem %s30_s16, 512  ;;  %p490_p4 = scmp.lt.s32.totalorder %s30_s16, %s30_s16 }
   0xa   :  { %p486_p3 = scmp.ne.s32.totalorder %s30_s16, %s485_s24  ;;  %p491_p5 = scmp.lt.s32.totalorder %s485_s24, %s485_s24 }
   0xc   :  { %p492_p6 = por %p491_p5, %p490_p4 }
   0xe   :  { %p493_p7 = pnand %p492_p6, %p486_p3 }
  0x10   :  { %496 = shalt.err (!%p493_p7)
}
  0x11   :  { %s570_s25 = smov 64   ;;  %s571_s26 = smov 4  }
  0x12   :  { %35 = dma.hbm_to_vmem [thread:$0]  %s707_s2, 512, %s30_s16, [#allocation6], %s570_s25, %s570_s25, %s571_s26  }
  0x13   :  { %s572_s29 = smov [#allocation2]   ;;  %s573_s5 = smov [#allocation7]  }
  0x14   :  { %s18_s30 = sshll.u32 %s572_s29, 4  ;;  %s41_s6 = sshll.u32 %s573_s5, 4  ;;  %s19_s30 = int_to_ptr.vmem [resolvable:$true] %s18_s30  ;;  %s42_s6 = int_to_ptr.vmem [resolvable:$true] %s41_s6 }
  0x15   :  { %s497_s9 = scalar_lea.hbm %s705_s0, 16 }
  0x16   :  { %p498_p8 = scmp.ne.s32.totalorder %s705_s0, %s497_s9  ;;  %p501_p9 = scmp.lt.u32.totalorder %s497_s9, %s705_s0 }
  0x18   :  { %p503_p10 = pnand %p501_p9, %p498_p8 }
  0x1a   :  { %506 = shalt.err (!%p503_p10)
}
  0x1b   :  { %s507_s2 = scalar_lea.vmem %s19_s30, 16  ;;  %s511_s14 = scalar_lea.vmem %s19_s30, 32 }
  0x1c   :  { %p508_p11 = scmp.ne.s32.totalorder %s19_s30, %s507_s2  ;;  %p512_p12 = scmp.lt.s32.totalorder %s19_s30, %s19_s30 }
  0x1d   :  { %p513_p13 = scmp.lt.s32.totalorder %s511_s14, %s507_s2 }
  0x1f   :  { %p514_p0 = por %p513_p13, %p512_p12 }
  0x21   :  { %p515_p1 = pnand %p514_p0, %p508_p11 }
  0x23   :  { %518 = shalt.err (!%p515_p1)
}
  0x24   :  { %21 = dma.hbm_to_vmem [thread:$0]  %s705_s0, 16, %s19_s30, [#allocation3]  }
  0x25   :  { %s519_s19 = scalar_lea.hbm %s708_s3, 512 }
  0x26   :  { %p520_p2 = scmp.ne.s32.totalorder %s708_s3, %s519_s19  ;;  %p523_p3 = scmp.lt.u32.totalorder %s519_s19, %s708_s3 }
  0x28   :  { %p525_p4 = pnand %p523_p3, %p520_p2 }
  0x2a   :  { %528 = shalt.err (!%p525_p4)
}
  0x2b   :  { %s529_s24 = scalar_lea.vmem %s42_s6, 512  ;;  %p534_p6 = scmp.lt.s32.totalorder %s42_s6, %s42_s6 }
  0x2c   :  { %p530_p5 = scmp.ne.s32.totalorder %s42_s6, %s529_s24  ;;  %p535_p7 = scmp.lt.s32.totalorder %s529_s24, %s529_s24 }
  0x2e   :  { %p536_p8 = por %p535_p7, %p534_p6 }
  0x30   :  { %p537_p9 = pnand %p536_p8, %p530_p5 }
  0x32   :  { %540 = shalt.err (!%p537_p9)
}
  0x33   :  { %47 = dma.hbm_to_vmem [thread:$0]  %s708_s3, 512, %s42_s6, [#allocation6], %s570_s25, %s570_s25, %s571_s26  }
  0x34   :  { %563 = dma.done.wait [#allocation3], 16  }
  0x35   :  { %564 = vsyncadd [#allocation3], 4294967280 }
  0x36   :  { %565 = dma.done.wait [#allocation6], 1024  }
  0x37   :  { %566 = vsyncadd [#allocation6], 4294966272  ;;  %v60_v0 = vlaneseq  ;;  %v362_v7 = vld [vmem:[%s706_s1] ss:$0 sm:$0xff]  ;;  %v467_v8 = vld [vmem:[#allocation7] sm:$0xff]   ;;  %vm137_vm5 = vcmask 523264  }
  0x38   :  { %v468_v9 = vld [vmem:[#allocation5] sm:$0xff]   ;;  %v574_v10 = vmov 1.0|1.0   ;;  %428 = vmatprep.mubr.msk.bf16.mxu1 %vm137_vm5, %v467_v8  ;;  %v469_v13 = vld [vmem:[#allocation7 + $0x8] sm:$0xff]   ;;  %v471_v15 = vld [vmem:[#allocation7 + $0x10] sm:$0xff]   ;;  %s575_s1 = smov [#allocation8]  }
  0x39   :  { %v643_v1 = vshrl.u32 %v60_v0, 7  ;;  %444 = vmatprep.mubr.msk.bf16.mxu0 %vm137_vm5, %v468_v9  ;;  %v470_v14 = vld [vmem:[#allocation5 + $0x8] sm:$0xff]   ;;  %v472_v16 = vld [vmem:[#allocation5 + $0x10] sm:$0xff]   ;;  %v473_v17 = vld [vmem:[#allocation7 + $0x18] sm:$0xff]   ;;  %s352_s26 = sshll.u32 %s575_s1, 4  ;;  %s353_s26 = int_to_ptr.vmem [resolvable:$true] %s352_s26 }
  0x3a   :  { %v474_v18 = vld [vmem:[#allocation5 + $0x18] sm:$0xff]   ;;  %s541_s28 = scalar_lea.vmem %s353_s26, 16  ;;  %s545_s29 = scalar_lea.vmem %s353_s26, 32 }
  0x3b   :  { %v646_v2 = vadd.s32 8, %v643_v1  ;;  %v649_v3 = vadd.s32 16, %v643_v1  ;;  %v652_v4 = vadd.s32 24, %v643_v1  ;;  %v655_v5 = vadd.s32 32, %v643_v1  ;;  %v403_v20 = vld [vmem:[#allocation2] ss:$0 sm:$0xff]  ;;  %p542_p10 = scmp.ne.s32.totalorder %s353_s26, %s541_s28  ;;  %p546_p11 = scmp.lt.s32.totalorder %s353_s26, %s353_s26 }
  0x3c   :  { %v658_v6 = vadd.s32 40, %v643_v1  ;;  %vm73_vm0 = vcmp.eq.s32.totalorder %v643_v1, %v362_v7  ;;  %v670_v11 = vadd.s32 48, %v643_v1  ;;  %v673_v12 = vadd.s32 56, %v643_v1  ;;  %p547_p12 = scmp.lt.s32.totalorder %s545_s29, %s541_s28 }
  0x3d   :  { %vm74_vm1 = vcmp.eq.s32.totalorder %v646_v2, %v362_v7  ;;  %vm75_vm2 = vcmp.eq.s32.totalorder %v649_v3, %v362_v7  ;;  %vm76_vm3 = vcmp.eq.s32.totalorder %v652_v4, %v362_v7  ;;  %vm77_vm7 = vcmp.eq.s32.totalorder %v655_v5, %v362_v7 }
  0x3e   :  { %vm375_vm4 = vmpackc.low %vm74_vm1, %vm73_vm0  ;;  %vm78_vm8 = vcmp.eq.s32.totalorder %v658_v6, %v362_v7  ;;  %vm79_vm10 = vcmp.eq.s32.totalorder %v670_v11, %v362_v7  ;;  %vm80_vm11 = vcmp.eq.s32.totalorder %v673_v12, %v362_v7  ;;  %vm316_vm13 = vcmp.eq.s32.totalorder %v643_v1, %v403_v20  ;;  %p548_p13 = por %p547_p12, %p546_p11 }
  0x3f   :  { %420 = vmatprep.subr.msk.bf16.mxu1 %vm375_vm4, %v574_v10  ;;  %436 = vmatprep.subr.msk.bf16.mxu0 %vm375_vm4, %v574_v10  ;;  %vm377_vm6 = vmpackc.low %vm76_vm3, %vm75_vm2  ;;  %vm317_vm14 = vcmp.eq.s32.totalorder %v646_v2, %v403_v20  ;;  %vm318_vm15 = vcmp.eq.s32.totalorder %v649_v3, %v403_v20  ;;  %vm319_vm0 = vcmp.eq.s32.totalorder %v652_v4, %v403_v20 }
  0x40   :  { %421 = vmatpush3.bf16.msk.msra.mxu1 %vm375_vm4, %v574_v10  ;;  %437 = vmatpush3.bf16.msk.msra.mxu0 %vm375_vm4, %v574_v10  ;;  %vm379_vm9 = vmpackc.low %vm78_vm8, %vm77_vm7  ;;  %vm320_vm1 = vcmp.eq.s32.totalorder %v655_v5, %v403_v20  ;;  %vm321_vm2 = vcmp.eq.s32.totalorder %v658_v6, %v403_v20  ;;  %vm322_vm3 = vcmp.eq.s32.totalorder %v670_v11, %v403_v20  ;;  %p549_p0 = pnand %p548_p13, %p542_p10 }
  0x41   :  { %422 = vmatprep.subr.msk.bf16.mxu1 %vm377_vm6, %v574_v10  ;;  %438 = vmatprep.subr.msk.bf16.mxu0 %vm377_vm6, %v574_v10  ;;  %vm381_vm12 = vmpackc.low %vm80_vm11, %vm79_vm10  ;;  %vm323_vm4 = vcmp.eq.s32.totalorder %v673_v12, %v403_v20 }
  0x44   :  { %423 = vmatpush3.bf16.msk.msra.mxu1 %vm377_vm6, %v574_v10  ;;  %439 = vmatpush3.bf16.msk.msra.mxu0 %vm377_vm6, %v574_v10 }
  0x45   :  { %424 = vmatprep.subr.msk.bf16.mxu1 %vm379_vm9, %v574_v10  ;;  %440 = vmatprep.subr.msk.bf16.mxu0 %vm379_vm9, %v574_v10 }
  0x48   :  { %425 = vmatpush3.bf16.msk.msra.mxu1 %vm379_vm9, %v574_v10  ;;  %441 = vmatpush3.bf16.msk.msra.mxu0 %vm379_vm9, %v574_v10 }
  0x49   :  { %426 = vmatprep.subr.msk.bf16.mxu1 %vm381_vm12, %v574_v10  ;;  %442 = vmatprep.subr.msk.bf16.mxu0 %vm381_vm12, %v574_v10 }
  0x4c   :  { %427 = vmatpush3.bf16.msk.msra.mxu1 %vm381_vm12, %v574_v10  ;;  %443 = vmatpush3.bf16.msk.msra.mxu0 %vm381_vm12, %v574_v10 }
  0x4f   :  { %429 = vmatmul.mubr.msk.bf16.vlgmr.msra.gmra.mrb[0].mxu1 %vm137_vm5, %v469_v13  ;;  %445 = vmatmul.mubr.msk.bf16.vlgmr.msra.gmra.mrb[0].mxu0 %vm137_vm5, %v470_v14 }
  0x50   :  { %432 = vmatprep.mubr.msk.bf16.mxu1 %vm137_vm5, %v471_v15  ;;  %448 = vmatprep.mubr.msk.bf16.mxu0 %vm137_vm5, %v472_v16 }
  0x57   :  { %433 = vmatmul.mubr.msk.bf16.gmra.mrb[4].mxu1 %vm137_vm5, %v473_v17  ;;  %449 = vmatmul.mubr.msk.bf16.gmra.mrb[4].mxu0 %vm137_vm5, %v474_v18 }
 0x122   :  { %v430_v19 = vpop.f32.mrb[0].mxu1  ;;  %v446_v21 = vpop.f32.mrb[0].mxu0 }
 0x123   :  { %v290_v22 = vadd.f32 %v446_v21, %v430_v19  ;;  %v184_v23 = vpop.f32.mrb[1].mxu1  ;;  %v281_v24 = vpop.f32.mrb[1].mxu0 }
 0x124   :  { %v282_v25 = vadd.f32 %v281_v24, %v184_v23  ;;  %v431_v26 = vpop.f32.mrb[2].mxu1  ;;  %v447_v27 = vpop.f32.mrb[2].mxu0 }
 0x125   :  { %v293_v28 = vadd.f32 %v447_v27, %v431_v26  ;;  %v187_v29 = vpop.f32.mrb[3].mxu1  ;;  %v284_v30 = vpop.f32.mrb[3].mxu0  ;;  %v326_v35 = vsel %vm318_vm15, %v290_v22, 0.0 }
 0x126   :  { %v285_v31 = vadd.f32 %v284_v30, %v187_v29  ;;  %v324_v32 = vsel %vm316_vm13, %v282_v25, 0.0 }
 0x127   :  { %v327_v42 = vsel %vm319_vm0, %v293_v28, 0.0 }
 0x128   :  { %v325_v33 = vsel %vm317_vm14, %v285_v31, 0.0 }
 0x129   :  { %v332_v34 = vadd.f32 %v325_v33, %v324_v32 }
 0x12a   :  { %v434_v36 = vpop.f32.mrb[4].mxu1  ;;  %v450_v37 = vpop.f32.mrb[4].mxu0 }
 0x12b   :  { %v333_v38 = vadd.f32 %v332_v34, %v326_v35  ;;  %v306_v39 = vadd.f32 %v450_v37, %v434_v36  ;;  %v200_v40 = vpop.f32.mrb[5].mxu1  ;;  %v297_v41 = vpop.f32.mrb[5].mxu0 }
 0x12c   :  { %v298_v43 = vadd.f32 %v297_v41, %v200_v40  ;;  %v435_v44 = vpop.f32.mrb[6].mxu1  ;;  %v451_v45 = vpop.f32.mrb[6].mxu0 }
 0x12d   :  { %v334_v46 = vadd.f32 %v333_v38, %v327_v42  ;;  %v309_v47 = vadd.f32 %v451_v45, %v435_v44  ;;  %v203_v48 = vpop.f32.mrb[7].mxu1  ;;  %v300_v49 = vpop.f32.mrb[7].mxu0  ;;  %v330_v55 = vsel %vm322_vm3, %v306_v39, 0.0 }
 0x12e   :  { %v328_v50 = vsel %vm320_vm1, %v298_v43, 0.0  ;;  %v301_v51 = vadd.f32 %v300_v49, %v203_v48 }
 0x12f   :  { %v335_v52 = vadd.f32 %v334_v46, %v328_v50  ;;  %v331_v57 = vsel %vm323_vm4, %v309_v47, 0.0 }
 0x130   :  { %v329_v53 = vsel %vm321_vm2, %v301_v51, 0.0 }
 0x131   :  { %v336_v54 = vadd.f32 %v335_v52, %v329_v53 }
 0x133   :  { %v337_v56 = vadd.f32 %v336_v54, %v330_v55 }
 0x135   :  { %v338_v58 = vadd.f32 %v337_v56, %v331_v57 }
 0x137   :  { %v339_v59 = vrot.slane %v338_v58, 4 }
 0x139   :  { %v340_v60 = vadd.f32 %v339_v59, %v338_v58 }
 0x13b   :  { %v341_v61 = vrot.slane %v340_v60, 2 }
 0x13d   :  { %v342_v62 = vadd.f32 %v341_v61, %v340_v60 }
 0x13f   :  { %v343_v63 = vrot.slane %v342_v62, 1 }
 0x141   :  { %v344_v0 = vadd.f32 %v343_v63, %v342_v62 }
 0x143   :  { %345 = vst [vmem:[#allocation8] sm:$0x1] %v344_v0 }
 0x144   :  { %552 = shalt.err (!%p549_p0)
}
 0x145   :  { %s553_s6 = scalar_lea.hbm %s709_s4, 16 }
 0x146   :  { %p554_p1 = scmp.ne.s32.totalorder %s709_s4, %s553_s6  ;;  %p557_p2 = scmp.lt.u32.totalorder %s553_s6, %s709_s4 }
 0x148   :  { %p559_p3 = pnand %p557_p2, %p554_p1 }
 0x14a   :  { %562 = shalt.err (!%p559_p3)
}
 0x14b   :  { %355 = dma.vmem_to_hbm [thread:$0]  %s353_s26, 16, %s709_s4, [#allocation4]  }
 0x14c   :  { %567 = dma.done.wait [#allocation4], 16  }
 0x14d   :  { %568 = vsyncadd [#allocation4], 4294967280 }
 0x14e   :  { %359 = vsyncpa [#allocation3], 1 }
 0x14f   :  { %360 = vsyncpa [#allocation6], 1 }
 0x150   :  { %361 = vsyncpa [#allocation4], 1 }

</bundles_post_ra>
